<compile_context>
chip_gen: v5e
topology: v5e:2x2
jax: 0.10.0
libtpu: 0.0.40
codegen_flags: <defaults>
</compile_context>

<pallas_src>
import jax
import jax.numpy as jnp
from jax import lax
from jax.experimental import pallas as pl
from jax.experimental.pallas import tpu as pltpu


# ----------------------------------------------------------------------------
# helpers
# ----------------------------------------------------------------------------

def _pick_batch_tile(batch, per_sample_bytes, *, target_bytes=1 << 20):
    """Largest divisor of `batch` such that (a) the per-step input block stays
    near `target_bytes` (Pallas double-buffers it) and (b) the grid length is
    >= 2 whenever batch >= 2, so the "parallel" batch axis can be split across
    v7x's two TensorCores."""
    cap = batch if batch < 2 else batch // 2
    cap = max(1, min(cap, max(1, target_bytes // max(per_sample_bytes, 1))))
    for d in range(cap, 0, -1):
        if batch % d == 0:
            return d
    return 1


def _compiler_params(block_bytes):
    """Explicit scoped-VMEM budget: double-buffered blocks + headroom, clamped
    to 64 MiB so the same request is valid on v7x (64 MiB physical VMEM) and
    raises the 16/32 MiB scoped defaults on v5e/v6e."""
    limit = int(min(max(4 * block_bytes, 32 << 20), 64 << 20))
    return pltpu.CompilerParams(dimension_semantics=("parallel",),
                                vmem_limit_bytes=limit)


def _pair_avg_matrix(n, m, dtype):
    """(n, m) matrix A with A[2j, j] = A[2j+1, j] = 0.5 (pairwise mean), else 0."""
    rows = jnp.arange(n)[:, None] // 2
    cols = jnp.arange(m)[None, :]
    return jnp.where(rows == cols, 0.5, 0.0).astype(dtype)


def _decimate3_matrix(L, Lo, dtype):
    """(L, 3*Lo) 0/1 selection matrix: column t*Lo + j picks xpad[2j + t], where
    xpad is x right-padded by one zero (the pad row simply does not exist, so
    the padded tap comes out as exactly 0)."""
    i = jnp.arange(L)[:, None]
    j = jnp.arange(Lo)[None, :]
    cols = [(i == (2 * j + t)).astype(dtype) for t in (0, 1, 2)]
    return jnp.concatenate(cols, axis=1)


# ----------------------------------------------------------------------------
# avg-pool path (with_conv=False): F.avg_pool2d(x, 2, stride=2) on (B, C, L)
#   -> 2x2 / stride-2 mean over the (C, L) dims, output (B, C//2, L//2)
# ----------------------------------------------------------------------------

def _avg_pool_kernel(x_ref, pcm_ref, plm_ref, o_ref):
    bt, C, L = x_ref.shape
    _, Co, Lo = o_ref.shape

    x2 = x_ref[...].reshape(bt * C, L)                    # fold batch into M (free reshape)
    # pool along L (lanes): one batch-folded MXU matmul in the caller's dtype
    y = jnp.dot(x2, plm_ref[...], preferred_element_type=jnp.float32)      # (bt*C, Lo)
    y3 = y.astype(x_ref.dtype).reshape(bt, C, Lo)
    # pool along C: ONE batched contraction (no per-sample Python loop)
    pcm_b = jnp.broadcast_to(pcm_ref[...], (bt, Co, C))   # hoisted, single broadcast
    z = jnp.einsum('boc,bcl->bol', pcm_b, y3, preferred_element_type=jnp.float32)
    o_ref[...] = z.astype(o_ref.dtype)


def downsample_avgpool(x, *, block_batch=None):
    B, C, L = x.shape
    Co, Lo = C // 2, L // 2
    itemsize = x.dtype.itemsize
    bt = block_batch or _pick_batch_tile(B, C * L * itemsize)
    assert B % bt == 0

    # Hoisted averaging matrices (constant block index -> resident in VMEM).
    # TODO(synk): for very large L, tile L in the grid (pairs never straddle an
    # even tile) so plm stays O(tile^2) VMEM instead of O(L^2).
    plm = _pair_avg_matrix(L, Lo, x.dtype)                # (L, Lo)
    pcm = _pair_avg_matrix(C, Co, x.dtype).T              # (Co, C)

    block_bytes = (bt * C * L + Co * C + L * Lo + bt * Co * Lo) * itemsize
    return pl.pallas_call(
        _avg_pool_kernel,
        out_shape=jax.ShapeDtypeStruct((B, Co, Lo), x.dtype),
        grid=(B // bt,),
        in_specs=[
            pl.BlockSpec((bt, C, L), lambda i: (i, 0, 0)),
            pl.BlockSpec((Co, C), lambda i: (0, 0)),
            pl.BlockSpec((L, Lo), lambda i: (0, 0)),
        ],
        out_specs=pl.BlockSpec((bt, Co, Lo), lambda i: (i, 0, 0)),
        compiler_params=_compiler_params(block_bytes),
    )(x, pcm, plm)


# ----------------------------------------------------------------------------
# conv path (with_conv=True): x = Conv1d(k=3, stride=2, pad=0)(F.pad(x, (0, 1)))
#   pad + stride-2 decimation fused in-kernel (no wrapper HBM round trip)
# ----------------------------------------------------------------------------

def _conv_down_kernel(x_ref, dec_ref, w_ref, b_ref, o_ref):
    bt, Cin, L = x_ref.shape
    _, Cout, Lo = o_ref.shape

    x2 = x_ref[...].reshape(bt * Cin, L)                  # fold batch into M (free reshape)
    # Fused right-pad + stride-2 decimation: one wide 0/1-selection matmul on
    # the idle MXU builds all 3 conv taps at once; lossless, so cast back to
    # the caller's dtype for the conv matmul (bf16 stays bf16).
    taps = jnp.dot(x2, dec_ref[...],
                   preferred_element_type=jnp.float32).astype(x_ref.dtype)  # (bt*Cin, 3*Lo)
    t0 = taps[:, :Lo].reshape(bt, Cin, Lo)                # xpad[2j]
    t1 = taps[:, Lo:2 * Lo].reshape(bt, Cin, Lo)          # xpad[2j + 1]
    t2 = taps[:, 2 * Lo:].reshape(bt, Cin, Lo)            # xpad[2j + 2] (last one is 0)
    patches = jnp.concatenate([t0, t1, t2], axis=1)       # (bt, 3*Cin, Lo)

    # Fused 3-tap conv for the whole block: ONE batched MXU matmul, K = 3*Cin,
    # lane-dense N = Lo; bias broadcast hoisted to a single add.
    w_b = jnp.broadcast_to(w_ref[...], (bt, Cout, 3 * Cin))
    y = jnp.einsum('bok,bkl->bol', w_b, patches, preferred_element_type=jnp.float32)
    o_ref[...] = (y + b_ref[...].astype(jnp.float32)).astype(o_ref.dtype)


def downsample_conv(x, conv_w, conv_b, *, block_batch=None):
    B, Cin, L = x.shape
    Cout, cin_w, kt = conv_w.shape                        # PyTorch Conv1d layout (Cout, Cin, 3)
    assert kt == 3 and cin_w == Cin
    Lo = (L - 2) // 2 + 1                                 # pad-right(1), k=3, s=2, p=0
    itemsize = x.dtype.itemsize
    bt = block_batch or _pick_batch_tile(B, Cin * L * itemsize)
    assert B % bt == 0

    # Hoisted constants (constant block index -> resident in VMEM).
    # TODO(synk): for very large L, tile L in the grid so dec stays O(tile^2) VMEM.
    dec = _decimate3_matrix(L, Lo, x.dtype)               # (L, 3*Lo)
    # (Cout, 3*Cin), column t*Cin + c  <->  PyTorch weight conv_w[o, c, t]
    w_flat = jnp.transpose(conv_w, (0, 2, 1)).reshape(Cout, 3 * Cin)
    b_col = conv_b.reshape(Cout, 1)

    block_bytes = (bt * Cin * L + L * 3 * Lo + Cout * 3 * Cin + Cout
                   + bt * Cout * Lo) * itemsize
    return pl.pallas_call(
        _conv_down_kernel,
        out_shape=jax.ShapeDtypeStruct((B, Cout, Lo), x.dtype),
        grid=(B // bt,),
        in_specs=[
            pl.BlockSpec((bt, Cin, L), lambda i: (i, 0, 0)),
            pl.BlockSpec((L, 3 * Lo), lambda i: (0, 0)),
            pl.BlockSpec((Cout, 3 * Cin), lambda i: (0, 0)),
            pl.BlockSpec((Cout, 1), lambda i: (0, 0)),
        ],
        out_specs=pl.BlockSpec((bt, Cout, Lo), lambda i: (i, 0, 0)),
        compiler_params=_compiler_params(block_bytes),
    )(x, dec, w_flat, b_col)


# ----------------------------------------------------------------------------
# module-level dispatcher (mirrors Downsample.forward) + pure-JAX reference
# ----------------------------------------------------------------------------

def downsample(x, *, with_conv=False, fir=False, fir_kernel=(1, 3, 3, 1),
               conv_w=None, conv_b=None, block_batch=None):
    del fir_kernel  # unused by the given forward
    if fir:
        # The given forward is an identity when fir=True (no FIR branch body).
        return x
    if with_conv:
        return downsample_conv(x, conv_w, conv_b, block_batch=block_batch)
    return downsample_avgpool(x, block_batch=block_batch)


def reference_downsample(x, *, with_conv=False, fir=False, conv_w=None, conv_b=None):
    if fir:
        return x
    if with_conv:
        xpad = jnp.pad(x, ((0, 0), (0, 0), (0, 1)))
        y = lax.conv_general_dilated(
            xpad, conv_w, window_strides=(2,), padding="VALID",
            dimension_numbers=("NCW", "OIW", "NCW"))
        return y + conv_b[None, :, None]
    # F.avg_pool2d on a 3-D (B, C, L) tensor pools 2x2 / stride-2 over (C, L).
    s = lax.reduce_window(x, 0.0, lax.add, (1, 2, 2), (1, 2, 2), "VALID")
    return 0.25 * s


# ----------------------------------------------------------------------------
# main
# ----------------------------------------------------------------------------

if __name__ == "__main__":
    B, C, L = 8, 16, 256        # L chosen so the output lane dim (L//2 = 128) is lane-dense
    Cout = 32
    key = jax.random.PRNGKey(0)
    kx, kw, kb = jax.random.split(key, 3)
    x = jax.random.normal(kx, (B, C, L), jnp.float32)                      # NCL, like PyTorch
    conv_w = (3 * C) ** -0.5 * jax.random.normal(kw, (Cout, C, 3), jnp.float32)  # (Cout, Cin, 3)
    conv_b = 0.05 * jax.random.normal(kb, (Cout,), jnp.float32)

    # default path: with_conv=False  ->  avg_pool2d(x, 2, stride=2)
    out_pool = jax.block_until_ready(downsample(x))
    assert out_pool.shape == (B, C // 2, L // 2)
    ref_pool = reference_downsample(x)
    if not bool(jnp.allclose(out_pool, ref_pool, rtol=2e-3, atol=2e-3)):
        err = float(jnp.max(jnp.abs(out_pool - ref_pool)))
        raise AssertionError(f"avg-pool path mismatch, max abs err = {err}")

    # with_conv=True path: pad right by 1 + Conv1d(k=3, stride=2, padding=0)
    out_conv = jax.block_until_ready(
        downsample(x, with_conv=True, conv_w=conv_w, conv_b=conv_b))
    assert out_conv.shape == (B, Cout, L // 2)
    ref_conv = reference_downsample(x, with_conv=True, conv_w=conv_w, conv_b=conv_b)
    if not bool(jnp.allclose(out_conv, ref_conv, rtol=2e-3, atol=2e-3)):
        err = float(jnp.max(jnp.abs(out_conv - ref_conv)))
        raise AssertionError(f"conv path mismatch, max abs err = {err}")

    print("KERNEL_OK")
</pallas_src>

<mosaic_0001>
module attributes {stable_mosaic.version = 11 : i64} {
  func.func @_avg_pool_kernel(%arg0: i32, %arg1: memref<4x16x256xf32, #tpu.memory_space<vmem>>, %arg2: memref<8x16xf32, #tpu.memory_space<vmem>>, %arg3: memref<256x128xf32, #tpu.memory_space<vmem>>, %arg4: memref<4x8x128xf32, #tpu.memory_space<vmem>>) attributes {dimension_semantics = [#tpu.dimension_semantics<parallel>], iteration_bounds = array<i64: 2>, scalar_prefetch = 0 : i64, scratch_operands = 0 : i64, tpu.core_type = #tpu.core_type<tc>, window_params = [{transform_indices = @transform_0, window_bounds = array<i64: 4, 16, 256>}, {pipeline_mode = #tpu.pipeline_mode<synchronous>, transform_indices = @transform_1, window_bounds = array<i64: 8, 16>}, {pipeline_mode = #tpu.pipeline_mode<synchronous>, transform_indices = @transform_2, window_bounds = array<i64: 256, 128>}, {transform_indices = @transform_3, window_bounds = array<i64: 4, 8, 128>}]} {
    %c0 = arith.constant 0 : index
    %c0_0 = arith.constant 0 : index
    %c0_1 = arith.constant 0 : index
    %0 = vector.load %arg1[%c0, %c0_0, %c0_1] : memref<4x16x256xf32, #tpu.memory_space<vmem>>, vector<4x16x256xf32>
    %1 = vector.shape_cast %0 : vector<4x16x256xf32> to vector<64x256xf32>
    %c0_2 = arith.constant 0 : index
    %c0_3 = arith.constant 0 : index
    %2 = vector.load %arg3[%c0_2, %c0_3] : memref<256x128xf32, #tpu.memory_space<vmem>>, vector<256x128xf32>
    %cst = arith.constant dense<0.000000e+00> : vector<64x128xf32>
    %3 = tpu.matmul %1, %2, %cst {dimension_numbers = #tpu.dot_dimension_numbers<[1], [0], [0], [1], [0, 0, 1, 1], [], []>} : vector<64x256xf32>, vector<256x128xf32>, vector<64x128xf32> -> vector<64x128xf32>
    %4 = vector.shape_cast %3 : vector<64x128xf32> to vector<4x16x128xf32>
    %c0_4 = arith.constant 0 : index
    %c0_5 = arith.constant 0 : index
    %5 = vector.load %arg2[%c0_4, %c0_5] : memref<8x16xf32, #tpu.memory_space<vmem>>, vector<8x16xf32>
    %6 = vector.shape_cast %5 : vector<8x16xf32> to vector<1x8x16xf32>
    %7 = vector.broadcast %6 : vector<1x8x16xf32> to vector<4x8x16xf32>
    "tpu.trace_start"() <{level = 10 : i32, message = "boc,bcl->bol"}> : () -> ()
    %cst_6 = arith.constant dense<0.000000e+00> : vector<4x8x128xf32>
    %8 = tpu.matmul %7, %4, %cst_6 {dimension_numbers = #tpu.dot_dimension_numbers<[2], [1], [1], [2], [0, 0, 0, 1, 1, 2], [0], [0]>} : vector<4x8x16xf32>, vector<4x16x128xf32>, vector<4x8x128xf32> -> vector<4x8x128xf32>
    "tpu.trace_stop"() : () -> ()
    %c0_7 = arith.constant 0 : index
    %c0_8 = arith.constant 0 : index
    %c0_9 = arith.constant 0 : index
    %9 = vector.load %arg4[%c0_7, %c0_8, %c0_9] : memref<4x8x128xf32, #tpu.memory_space<vmem>>, vector<4x8x128xf32>
    tpu.vector_store %arg4[%c0_7, %c0_8, %c0_9], %8 {strides = array<i32>} : memref<4x8x128xf32, #tpu.memory_space<vmem>>, vector<4x8x128xf32>,
    return
  }
  func.func @transform_0(%arg0: i32) -> (i32, i32, i32) {
    %c0_i32 = arith.constant 0 : i32
    %c0_i32_0 = arith.constant 0 : i32
    %c0_i32_1 = arith.constant 0 : i32
    return %arg0, %c0_i32, %c0_i32_0 : i32, i32, i32
  }
  func.func @transform_1(%arg0: i32) -> (i32, i32) {
    %c0_i32 = arith.constant 0 : i32
    %c0_i32_0 = arith.constant 0 : i32
    %c0_i32_1 = arith.constant 0 : i32
    return %c0_i32, %c0_i32_0 : i32, i32
  }
  func.func @transform_2(%arg0: i32) -> (i32, i32) {
    %c0_i32 = arith.constant 0 : i32
    %c0_i32_0 = arith.constant 0 : i32
    %c0_i32_1 = arith.constant 0 : i32
    return %c0_i32, %c0_i32_0 : i32, i32
  }
  func.func @transform_3(%arg0: i32) -> (i32, i32, i32) {
    %c0_i32 = arith.constant 0 : i32
    %c0_i32_0 = arith.constant 0 : i32
    %c0_i32_1 = arith.constant 0 : i32
    return %arg0, %c0_i32, %c0_i32_0 : i32, i32, i32
  }
}

</mosaic_0001>

<bundles_post_ra>
// kernel: tpu_custom_call.1
= control target key start
LH: loop header
LB: loop body
LE: loop exit
PB: predicated region body
PF: predicated region fallthrough
CT: control target
= control target key end

     0   :  { %s1041_s0 = inlined_call_operand.hbm [shape: f32[8,16,256], index: 0, kind: input, shape index: {}]   ;;  %s1042_s1 = inlined_call_operand.hbm [shape: f32[8,16], index: 1, kind: input, shape index: {}]   ;;  %s1043_s2 = inlined_call_operand.hbm [shape: f32[256,128], index: 2, kind: input, shape index: {}]   ;;  %s1044_s3 = inlined_call_operand.hbm [shape: f32[8,8,128], index: 3, kind: output, shape index: {}]  }
   0x1   :  { %1045 = sst [smem:[#allocation12_spill]] %s1042_s1 }
   0x2   :  { %8 = vsyncpa [#allocation3], 0 }
   0x3   :  { %10 = vsyncpa [#allocation3 + $0x1], 0 }
   0x4   :  { %11 = vsyncpa [#allocation6], 0 }
   0x5   :  { %12 = vsyncpa [#allocation4], 0 }
   0x6   :  { %14 = vsyncpa [#allocation4 + $0x1], 0  ;;  %s873_s12 = smov 0   ;;  %s875_s13 = smov 0  }
   0x7   :  { %s877_s14 = smov 0   ;;  %s879_s15 = smov 0  }
   0x8 LB: > { %s894_s16 = sadd.s32 4294967295, %s843_s15   ;;  %s552_s17 = sadd.s32 4294967294, %s843_s15   ;;  %s843_s15 = sphi %s879_s15, %s1057_s15   ;;  %s839_s14 = sphi %s877_s14, %s1056_s14   ;;  %s835_s13 = sphi %s875_s13, %s1055_s13   ;;  %s831_s12 = sphi %s873_s12, %s1054_s12  }
   0x9   : > { %s898_s18 = sadd.s32 1, %s843_s15   ;;  %s27_s19 = sadd.s32 1, %s839_s14 }
   0xa   : > { %s24_s20 = ssub.s32 %s843_s15, %s898_s18  ;;  %p34_p0 = scmp.ne.s32.totalorder %s839_s14, %s835_s13 }
   0xb   : > { %p25_p1 = scmp.eq.s32.totalorder %s24_s20, 0  ;;  %p35_p2 = scmp.eq.s32.totalorder %s843_s15, 0 }
   0xc   : > { %p40_p3 = scmp.ne.s32.totalorder %s835_s13, %s831_s12  ;;  %p41_p4 = scmp.eq.s32.totalorder %s894_s16, 0 }
   0xd   : > { %s910_s21 = scalar_select %p25_p1, %s839_s14, %s27_s19  }
   0xe   : > { %p912_p5 = por %p35_p2, %p34_p0  ;;  %p918_p6 = por %p41_p4, %p40_p3 }
   0xf   : > { %p106_p7 = scmp.eq.s32.totalorder %s894_s16, 1  ;;  %p112_p8 = scmp.eq.s32.totalorder %s552_s17, 1 }
  0x10   : > { %p553_p9 = scmp.ge.s32.totalorder %s843_s15, 1  ;;  %p119_p10 = scmp.lt.s32.totalorder %s843_s15, 3 }
  0x11   : > { %p925_p11 = por %p106_p7, %p34_p0  ;;  %p929_p12 = por %p112_p8, %p40_p3 }
  0x12   : > { %p933_p13 = pnand %p553_p9, %p119_p10  ;;  %s1051_s1 = sld [smem:[#allocation12_spill]] }
  0x13   : > { %s845_s30 = smov [#allocation5]   ;;  %p639_p3 = scmp.lt.s32.totalorder %s843_s15, 2 }
  0x14   : > { %p622_p1 = pneg %p933_p13  ;;  %s133_s4 = sshll.u32 %s845_s30, 4  ;;  %s134_s4 = int_to_ptr.vmem [resolvable:$true] %s133_s4 }
  0x15   : > { %s142_s7 = sshll.u32 %s1043_s2, 4  ;;  %p951_p7 = pnand %p639_p3, %p912_p5  ;;  %s143_s7 = int_to_ptr.hbm [resolvable:$true] %s142_s7 }
  0x16   : > { %p623_p2 = pnand %p622_p1, %p41_p4  ;;  %s846_s9 = smov [#allocation7]  }
  0x17   : > { %s144_s10 = sshll.u32 %s846_s9, 4  ;;  %s158_s11 = sand.u32 1, %s839_s14   ;;  %s145_s10 = int_to_ptr.vmem [resolvable:$true] %s144_s10 }
  0x18   : > { %s131_s29 = sshll.u32 %s1051_s1, 4  ;;  %s847_s17 = smov 128   ;;  %s132_s29 = int_to_ptr.hbm [resolvable:$true] %s131_s29 }
  0x19   : > { %625 = dma.hbm_to_vmem [thread:$0]  (!%p623_p2), %s132_s29, 128, %s134_s4, [#allocation6]  }
  0x1a   : > { %s848_s19 = smov 8   ;;  %s557_s20 = sshll.u32 %s158_s11, 7 }
  0x1b   : > { %628 = dma.hbm_to_vmem [thread:$0]  (!%p623_p2), %s143_s7, 4096, %s145_s10, [#allocation6], %s847_s17, %s847_s17, %s848_s19  }
  0x1c   : > { %s576_s27 = sshll.u32 %s843_s15, 7  ;;  %s162_s29 = scalar_lea.vmem [#allocation2], %s557_s20 }
  0x1d   : > { %s168_s5 = scalar_lea.hbm %s1041_s0, %s576_s27  ;;  %s171_s22 = sshll.u32 %s162_s29, 4  ;;  %s172_s22 = int_to_ptr.vmem [resolvable:$true] %s171_s22 }
  0x1e   : > { %s169_s4 = sshll.u32 %s168_s5, 4  ;;  %s159_s6 = scalar_lea.sflag [#allocation3], %s158_s11  ;;  %s170_s4 = int_to_ptr.hbm [resolvable:$true] %s169_s4 }
  0x1f   : > { %s743_s1 = sshra.s32 %s170_s4, 4  ;;  %p747_p8 = pneg %p951_p7  ;;  %s744_s1 = int_to_ptr.hbm [resolvable:$true] %s743_s1 }
  0x20   : > { %s745_s9 = scalar_lea.hbm %s744_s1, 128  ;;  %s750_s17 = scalar_lea.hbm %s1041_s0, 256 }
  0x21   : > { %p746_p5 = scmp.ne.s32.totalorder %s744_s1, %s745_s9  ;;  %p751_p1 = scmp.lt.s32.totalorder %s744_s1, %s1041_s0 }
  0x22   : > { %p752_p2 = scmp.lt.s32.totalorder %s750_s17, %s745_s9 }
  0x23   : > { %p748_p9 = pnand %p747_p8, %p746_p5 }
  0x24   : > { %p753_p3 = por %p752_p2, %p751_p1 }
  0x25   : > { %p749_p10 = pneg %p748_p9 }
  0x27   : > { %p754_p0 = pnand %p753_p3, %p749_p10 }
  0x29   : > { %757 = shalt.err (!%p754_p0)
}
  0x2a   : > { %s849_s11 = smov 256   ;;  %s850_s20 = smov 16  }
  0x2b   : > { %632 = dma.hbm_to_vmem [thread:$0]  (!%p951_p7), %s170_s4, 2048, %s172_s22, %s159_s6, %s849_s11, %s849_s11, %s850_s20  }
  0x2c   : > { %183 = sbr.rel (%p933_p13) target bundleno = 384 (0x180), region = 32  ;;  %s973_s28 = sand.u32 (!%p933_p13), 1, %s835_s13  }
  0x2d   : > { %s562_s30 = sshll.u32 (!%p933_p13), %s973_s28, 7  ;;  %s186_s1 = scalar_lea.sflag (!%p933_p13), [#allocation3], %s973_s28 }
  0x2e   : > { %s977_s5 = scalar_lea.vmem (!%p933_p13), [#allocation2], %s562_s30 }
  0x31   : > { %818 = dma.done.wait (%p918_p6), %s186_s1, 2048  }
  0x32   : > { %820 = vsyncadd (%p918_p6), %s186_s1, 4294965248 }
  0x33   : > { %822 = dma.done.wait (%p41_p4), [#allocation6], 4224  }
  0x34   : > { %824 = vsyncadd (%p41_p4), [#allocation6], 4294963072  ;;  %v256_v0 = vld [vmem:[#allocation7 + $0x78] sm:$0xff]  ;;  %v255_v2 = vld [vmem:[#allocation7 + $0x70] sm:$0xff]  ;;  %vm356_vm0 = vcmask 130048   ;;  %s565_s23 = sshll.u32 %s973_s28, 5 }
  0x35   : > { %v272_v1 = vld [vmem:[#allocation7 + $0xf8] sm:$0xff]  ;;  %273 = vmatpush.msra.mxu0 %v256_v0  ;;  %v271_v3 = vld [vmem:[#allocation7 + $0xf0] sm:$0xff]  ;;  %v254_v4 = vld [vmem:[#allocation7 + $0x68] sm:$0xff]  ;;  %578 = vmatpush.msra.mxu2 %v256_v0  ;;  %s222_s26 = scalar_lea.vmem [#allocation8], %s565_s23  ;;  %s577_s8 = sshll.u32 %s894_s16, 5 }
  0x36   : > { %314 = vmatpush.msra.mxu1 %v272_v1  ;;  %v270_v5 = vld [vmem:[#allocation7 + $0xe8] sm:$0xff]  ;;  %594 = vmatpush.msra.mxu3 %v272_v1  ;;  %v253_v6 = vld [vmem:[#allocation7 + $0x60] sm:$0xff]  ;;  %v252_v8 = vld [vmem:[#allocation7 + $0x58] sm:$0xff]  ;;  %s456_s4 = scalar_lea.hbm %s1044_s3, %s577_s8  ;;  %s457_s6 = sshll.u32 %s222_s26, 4  ;;  %s458_s6 = int_to_ptr.vmem [resolvable:$true] %s457_s6 }
  0x37   : > { %274 = vmatpush.msra.mxu0 %v255_v2  ;;  %v269_v7 = vld [vmem:[#allocation7 + $0xe0] sm:$0xff]  ;;  %579 = vmatpush.msra.mxu2 %v255_v2  ;;  %v268_v9 = vld [vmem:[#allocation7 + $0xd8] sm:$0xff]  ;;  %v251_v10 = vld [vmem:[#allocation7 + $0x50] sm:$0xff]  ;;  %s459_s9 = sshll.u32 %s456_s4, 4  ;;  %s445_s7 = scalar_lea.sflag [#allocation4], %s973_s28  ;;  %s460_s9 = int_to_ptr.hbm [resolvable:$true] %s459_s9 }
  0x38   : > { %315 = vmatpush.msra.mxu1 %v271_v3  ;;  %595 = vmatpush.msra.mxu3 %v271_v3  ;;  %v267_v11 = vld [vmem:[#allocation7 + $0xd0] sm:$0xff]  ;;  %v250_v12 = vld [vmem:[#allocation7 + $0x48] sm:$0xff]  ;;  %v249_v14 = vld [vmem:[#allocation7 + $0x40] sm:$0xff]  ;;  %s787_s10 = sshra.s32 %s460_s9, 4  ;;  %s793_s27 = scalar_lea.hbm %s1044_s3, 64  ;;  %s788_s10 = int_to_ptr.hbm [resolvable:$true] %s787_s10 }
  0x39   : > { %275 = vmatpush.msra.mxu0 %v254_v4  ;;  %580 = vmatpush.msra.mxu2 %v254_v4  ;;  %v266_v13 = vld [vmem:[#allocation7 + $0xc8] sm:$0xff]  ;;  %v265_v15 = vld [vmem:[#allocation7 + $0xc0] sm:$0xff]  ;;  %v248_v16 = vld [vmem:[#allocation7 + $0x38] sm:$0xff]  ;;  %s789_s17 = scalar_lea.hbm %s788_s10, 32  ;;  %p794_p0 = scmp.lt.s32.totalorder %s788_s10, %s1044_s3 }
  0x3a   : > { %316 = vmatpush.msra.mxu1 %v270_v5  ;;  %596 = vmatpush.msra.mxu3 %v270_v5  ;;  %v264_v17 = vld [vmem:[#allocation7 + $0xb8] sm:$0xff]  ;;  %v247_v18 = vld [vmem:[#allocation7 + $0x30] sm:$0xff]  ;;  %v246_v20 = vld [vmem:[#allocation7 + $0x28] sm:$0xff]  ;;  %p790_p4 = scmp.ne.s32.totalorder %s788_s10, %s789_s17  ;;  %p795_p7 = scmp.lt.s32.totalorder %s793_s27, %s789_s17 }
  0x3b   : > { %276 = vmatpush.msra.mxu0 %v253_v6  ;;  %581 = vmatpush.msra.mxu2 %v253_v6  ;;  %v263_v19 = vld [vmem:[#allocation7 + $0xb0] sm:$0xff]  ;;  %v262_v21 = vld [vmem:[#allocation7 + $0xa8] sm:$0xff]  ;;  %v245_v22 = vld [vmem:[#allocation7 + $0x20] sm:$0xff] }
  0x3c   : > { %317 = vmatpush.msra.mxu1 %v269_v7  ;;  %597 = vmatpush.msra.mxu3 %v269_v7  ;;  %v261_v23 = vld [vmem:[#allocation7 + $0xa0] sm:$0xff]  ;;  %v244_v24 = vld [vmem:[#allocation7 + $0x18] sm:$0xff]  ;;  %v243_v26 = vld [vmem:[#allocation7 + $0x10] sm:$0xff]  ;;  %p791_p6 = pnand %p790_p4, %p925_p11  ;;  %p796_p5 = por %p795_p7, %p794_p0 }
  0x3d   : > { %277 = vmatpush.msra.mxu0 %v252_v8  ;;  %582 = vmatpush.msra.mxu2 %v252_v8  ;;  %v260_v25 = vld [vmem:[#allocation7 + $0x98] sm:$0xff]  ;;  %v259_v27 = vld [vmem:[#allocation7 + $0x90] sm:$0xff]  ;;  %v242_v28 = vld [vmem:[#allocation7 + $0x8] sm:$0xff] }
  0x3e   : > { %318 = vmatpush.msra.mxu1 %v268_v9  ;;  %598 = vmatpush.msra.mxu3 %v268_v9  ;;  %v258_v29 = vld [vmem:[#allocation7 + $0x88] sm:$0xff]  ;;  %v241_v30 = vld [vmem:[#allocation7] sm:$0xff]  ;;  %v225_v32 = vld [vmem:[%s977_s5] sm:$0xff]  ;;  %p792_p13 = pneg %p791_p6 }
  0x3f   : > { %278 = vmatpush.msra.mxu0 %v251_v10  ;;  %583 = vmatpush.msra.mxu2 %v251_v10  ;;  %v257_v31 = vld [vmem:[#allocation7 + $0x80] sm:$0xff]  ;;  %v235_v34 = vld [vmem:[%s977_s5 + $0x50] sm:$0xff]  ;;  %v236_v35 = vld [vmem:[%s977_s5 + $0x58] sm:$0xff] }
  0x40   : > { %319 = vmatpush.msra.mxu1 %v267_v11  ;;  %599 = vmatpush.msra.mxu3 %v267_v11  ;;  %v226_v33 = vld [vmem:[%s977_s5 + $0x8] sm:$0xff]  ;;  %v227_v36 = vld [vmem:[%s977_s5 + $0x10] sm:$0xff]  ;;  %v228_v37 = vld [vmem:[%s977_s5 + $0x18] sm:$0xff]  ;;  %p797_p8 = pnand %p796_p5, %p792_p13 }
  0x41   : > { %279 = vmatpush.msra.mxu0 %v250_v12  ;;  %584 = vmatpush.msra.mxu2 %v250_v12  ;;  %v237_v38 = vld [vmem:[%s977_s5 + $0x60] sm:$0xff]  ;;  %v238_v39 = vld [vmem:[%s977_s5 + $0x68] sm:$0xff]  ;;  %v239_v42 = vld [vmem:[%s977_s5 + $0x70] sm:$0xff] }
  0x42   : > { %320 = vmatpush.msra.mxu1 %v266_v13  ;;  %600 = vmatpush.msra.mxu3 %v266_v13  ;;  %v229_v40 = vld [vmem:[%s977_s5 + $0x20] sm:$0xff]  ;;  %v230_v41 = vld [vmem:[%s977_s5 + $0x28] sm:$0xff]  ;;  %v240_v43 = vld [vmem:[%s977_s5 + $0x78] sm:$0xff] }
  0x43   : > { %280 = vmatpush.msra.mxu0 %v249_v14  ;;  %585 = vmatpush.msra.mxu2 %v249_v14  ;;  %v231_v44 = vld [vmem:[%s977_s5 + $0x30] sm:$0xff]  ;;  %v232_v45 = vld [vmem:[%s977_s5 + $0x38] sm:$0xff]  ;;  %v233_v46 = vld [vmem:[%s977_s5 + $0x40] sm:$0xff] }
  0x44   : > { %321 = vmatpush.msra.mxu1 %v265_v15  ;;  %601 = vmatpush.msra.mxu3 %v265_v15  ;;  %v234_v47 = vld [vmem:[%s977_s5 + $0x48] sm:$0xff]  ;;  %v355_v57 = vld [vmem:[#allocation5] sm:$0xff] }
  0x45   : > { %281 = vmatpush.msra.mxu0 %v248_v16  ;;  %586 = vmatpush.msra.mxu2 %v248_v16 }
  0x46   : > { %322 = vmatpush.msra.mxu1 %v264_v17  ;;  %602 = vmatpush.msra.mxu3 %v264_v17 }
  0x47   : > { %282 = vmatpush.msra.mxu0 %v247_v18  ;;  %587 = vmatpush.msra.mxu2 %v247_v18 }
  0x48   : > { %323 = vmatpush.msra.mxu1 %v263_v19  ;;  %603 = vmatpush.msra.mxu3 %v263_v19 }
  0x49   : > { %283 = vmatpush.msra.mxu0 %v246_v20  ;;  %588 = vmatpush.msra.mxu2 %v246_v20 }
  0x4a   : > { %324 = vmatpush.msra.mxu1 %v262_v21  ;;  %604 = vmatpush.msra.mxu3 %v262_v21 }
  0x4b   : > { %284 = vmatpush.msra.mxu0 %v245_v22  ;;  %589 = vmatpush.msra.mxu2 %v245_v22 }
  0x4c   : > { %325 = vmatpush.msra.mxu1 %v261_v23  ;;  %605 = vmatpush.msra.mxu3 %v261_v23 }
  0x4d   : > { %285 = vmatpush.msra.mxu0 %v244_v24  ;;  %590 = vmatpush.msra.mxu2 %v244_v24 }
  0x4e   : > { %326 = vmatpush.msra.mxu1 %v260_v25  ;;  %606 = vmatpush.msra.mxu3 %v260_v25 }
  0x4f   : > { %286 = vmatpush.msra.mxu0 %v243_v26  ;;  %591 = vmatpush.msra.mxu2 %v243_v26 }
  0x50   : > { %327 = vmatpush.msra.mxu1 %v259_v27  ;;  %607 = vmatpush.msra.mxu3 %v259_v27 }
  0x51   : > { %287 = vmatpush.msra.mxu0 %v242_v28  ;;  %592 = vmatpush.msra.mxu2 %v242_v28 }
  0x52   : > { %328 = vmatpush.msra.mxu1 %v258_v29  ;;  %608 = vmatpush.msra.mxu3 %v258_v29 }
  0x53   : > { %288 = vmatpush.msra.mxu0 %v241_v30  ;;  %593 = vmatpush.msra.mxu2 %v241_v30 }
  0x54   : > { %329 = vmatpush.msra.mxu1 %v257_v31  ;;  %289 = vmatmul.f32.vlgmr.msra.gmra.mxu0 %v225_v32 }
  0x55   : > { %330 = vmatmul.f32.vlgmr.msra.gmra.mxu1 %v226_v33  ;;  %609 = vmatpush.msra.mxu3 %v257_v31 }
  0x56   : > { %304 = vmatmul.f32.vlgmr.msra.gmra.mxu2 %v235_v34  ;;  %345 = vmatmul.f32.vlgmr.msra.gmra.mxu3 %v236_v35 }
  0x5c   : > { %292 = vmatmul.f32.gmra.mxu0 %v227_v36 }
  0x5d   : > { %333 = vmatmul.f32.gmra.mxu1 %v228_v37 }
  0x5e   : > { %307 = vmatmul.f32.gmra.mxu2 %v237_v38  ;;  %348 = vmatmul.f32.gmra.mxu3 %v238_v39 }
  0x64   : > { %295 = vmatmul.f32.gmra.mxu0 %v229_v40 }
  0x65   : > { %336 = vmatmul.f32.gmra.mxu1 %v230_v41 }
  0x66   : > { %310 = vmatmul.f32.gmra.mxu2 %v239_v42  ;;  %351 = vmatmul.f32.gmra.mxu3 %v240_v43 }
  0x6c   : > { %298 = vmatmul.f32.gmra.mxu0 %v231_v44 }
  0x6d   : > { %339 = vmatmul.f32.gmra.mxu1 %v232_v45 }
  0x74   : > { %301 = vmatmul.f32.gmra.mxu0 %v233_v46 }
  0x75   : > { %342 = vmatmul.f32.gmra.mxu1 %v234_v47 }
  0xd1   : > { %v290_v48 = vpop.f32.mrf.mxu0 }
  0xd2   : > { %v331_v49 = vpop.f32.mrf.mxu1 }
  0xd3   : > { %v332_v56 = vadd.f32 %v331_v49, %v290_v48 }
  0xd9   : > { %v293_v50 = vpop.f32.mrf.mxu0  ;;  %v305_v53 = vpop.f32.mrf.mxu2 }
  0xda   : > { %v334_v51 = vpop.f32.mrf.mxu1  ;;  %v346_v54 = vpop.f32.mrf.mxu3 }
  0xdb   : > { %v335_v52 = vadd.f32 %v334_v51, %v293_v50  ;;  %v347_v55 = vadd.f32 %v346_v54, %v305_v53 }
  0xdd   : > { %374 = vmatpush.msrb.mxu2 %v335_v52 }
  0xdf   : > { %375 = vmatpush.msrb.mxu2 %v332_v56 }
  0xe0   : > { %566 = vmatmul.msk.f32.vlgmr.msrb.gmra.mxu2 %vm356_vm0, %v355_v57 }
  0xe1   : > { %414 = vmatpush.msra.mxu2 %v347_v55  ;;  %v296_v58 = vpop.f32.mrf.mxu0  ;;  %v308_v60 = vpop.f32.mrf.mxu2 }
  0xe2   : > { %v337_v59 = vpop.f32.mrf.mxu1  ;;  %v349_v61 = vpop.f32.mrf.mxu3 }
  0xe3   : > { %v338_v4 = vadd.f32 %v337_v59, %v296_v58  ;;  %v350_v5 = vadd.f32 %v349_v61, %v308_v60 }
  0xe9   : > { %v299_v62 = vpop.f32.mrf.mxu0  ;;  %v311_v1 = vpop.f32.mrf.mxu2 }
  0xea   : > { %v340_v63 = vpop.f32.mrf.mxu1  ;;  %v352_v2 = vpop.f32.mrf.mxu3 }
  0xeb   : > { %v341_v0 = vadd.f32 %v340_v63, %v299_v62  ;;  %v353_v3 = vadd.f32 %v352_v2, %v311_v1 }
  0xed   : > { %394 = vmatpush.msrb.mxu3 %v341_v0 }
  0xef   : > { %395 = vmatpush.msrb.mxu3 %v338_v4 }
  0xf0   : > { %567 = vmatmul.msk.f32.vlgmr.msrb.gmra.mxu3 %vm356_vm0, %v355_v57 }
  0xf1   : > { %434 = vmatpush.msra.mxu3 %v353_v3  ;;  %v302_v6 = vpop.f32.mrf.mxu0 }
  0xf2   : > { %v343_v7 = vpop.f32.mrf.mxu1 }
  0xf3   : > { %435 = vmatpush.msra.mxu3 %v350_v5  ;;  %v344_v8 = vadd.f32 %v343_v7, %v302_v6 }
  0xf5   : > { %415 = vmatpush.msra.mxu2 %v344_v8 }
  0xf6   : > { %568 = vmatmul.msk.f32.vlgmr.msra.gmra.mxu2 %vm356_vm0, %v355_v57 }
  0xf8   : > { %569 = vmatmul.msk.f32.vlgmr.msra.gmra.mxu3 %vm356_vm0, %v355_v57 }
 0x163   : > { %v377_v9 = vpop.f32.mrf.mxu2 }
 0x164   : > { %440 = vst [vmem:[%s222_s26] sm:$0xff] %v377_v9 }
 0x173   : > { %v397_v10 = vpop.f32.mrf.mxu3 }
 0x174   : > { %441 = vst [vmem:[%s222_s26 + $0x8] sm:$0xff] %v397_v10 }
 0x179   : > { %v417_v11 = vpop.f32.mrf.mxu2 }
 0x17a   : > { %442 = vst [vmem:[%s222_s26 + $0x10] sm:$0xff] %v417_v11 }
 0x17b   : > { %v437_v12 = vpop.f32.mrf.mxu3 }
 0x17c   : > { %443 = vst [vmem:[%s222_s26 + $0x18] sm:$0xff] %v437_v12 }
 0x17d   : > { %800 = shalt.err (!%p797_p8)
}
 0x17e   : > { %s851_s28 = smov 128   ;;  %s852_s30 = smov 8  }
 0x17f   : > { %620 = dma.vmem_to_hbm [thread:$0]  (%p925_p11), %s458_s6, 512, %s460_s9, %s445_s7, %s851_s28, %s851_s28, %s852_s30  }
 0x180 PF: > { %s474_s1 = sand.u32 1, %s831_s12   ;;  %p1053_p9 = scmp.ge.s32.totalorder %s843_s15, 2 }
 0x181   : > { %s475_s5 = scalar_lea.sflag [#allocation4], %s474_s1 }
 0x182   : > { %p634_p10 = pnand %p1053_p9, %p929_p12 }
 0x184   : > { %p635_p1 = pneg %p634_p10 }
 0x186   : > { %826 = dma.done.wait (%p635_p1), %s475_s5, 512  }
 0x187   : > { %828 = vsyncadd (%p635_p1), %s475_s5, 4294966784  ;;  %p17_p2 = scmp.ge.s32.totalorder %s898_s18, 4   ;;  %s1054_s12 = smov %s835_s13 }
 0x188   : > { %s1055_s13 = smov %s839_s14  ;;  %s1056_s14 = smov %s910_s21 }
 0x189   : > { %s1057_s15 = smov %s898_s18  ;;  %19 = sbr.rel (!%p17_p2) target bundleno = 8 (0x8), region = 85 }
 0x18e   :  { %481 = vsyncpa [#allocation3], 1 }
 0x18f   :  { %483 = vsyncpa [#allocation3 + $0x1], 1 }
 0x190   :  { %484 = vsyncpa [#allocation6], 1 }
 0x191   :  { %485 = vsyncpa [#allocation4], 1 }
 0x192   :  { %487 = vsyncpa [#allocation4 + $0x1], 1 }

</bundles_post_ra>
